<compile_context>
chip_gen: v7x
topology: tpu7x:2x2x1
jax: 0.10.0
libtpu: 0.0.40
codegen_flags: <defaults>
</compile_context>

<pallas_src>
import jax
import jax.numpy as jnp
import numpy as np
from jax.experimental import pallas as pl
from jax.experimental.pallas import tpu as pltpu


def attn_net_kernel(x_ref, w1_ref, b1_ref, w2_ref, b2_ref, o_ref):
    # ---- Linear(L, D): bf16 operands on the MXU, f32 accumulation. ----
    h = jnp.dot(x_ref[...], w1_ref[...], preferred_element_type=jnp.float32)
    # Bias add + tanh in f32 (VPU/EUP; v5e has no bf16 VPU/EUP path anyway).
    h = jnp.tanh(h + b1_ref[...])

    # ---- Linear(D, C) with tiny C: VPU multiply + lane reduce per class. ----
    # Avoids a second MXU push/pop where only 1 of 128/256 output lanes is used.
    w2 = w2_ref[...]                      # (C, D) f32
    b2 = b2_ref[...]                      # (1, C) f32
    n_classes = w2.shape[0]               # static
    cols = [
        jnp.sum(h * w2[c][None, :], axis=-1, keepdims=True)
        for c in range(n_classes)
    ]
    out = (cols[0] if n_classes == 1 else jnp.concatenate(cols, axis=-1)) + b2
    o_ref[...] = out.astype(o_ref.dtype)


def attn_net_forward(x, w1, b1, w2, b2, *, tm=512):
    """Attn_Net forward.

    x : [N, L]     input features
    w1: [L, D]     first linear weight (already transposed from PyTorch layout)
    b1: [D] or [1, D]
    w2: [D, C]     second linear weight (already transposed)
    b2: [C] or [1, C]
    returns [N, C] float32
    """
    N, L = x.shape
    D = w1.shape[1]
    C = w2.shape[1]

    # Matmul operands in bf16 (halves HBM traffic for the dominant x stream);
    # everything elementwise / accumulated stays f32.
    x_bf = x.astype(jnp.bfloat16)
    w1_bf = w1.astype(jnp.bfloat16)
    b1_f = jnp.asarray(b1, jnp.float32).reshape(1, D)
    w2_rows = jnp.asarray(w2, jnp.float32).T.reshape(C, D)   # (C, D) for VPU reduce
    b2_f = jnp.asarray(b2, jnp.float32).reshape(1, C)

    # Row tile: as large as reasonable for HBM efficiency, clamped + 8-aligned
    # for small N. Pad N up to a multiple of tm (rows are independent).
    tm = max(8, min(tm, pl.cdiv(N, 8) * 8))
    n_pad = pl.cdiv(N, tm) * tm
    if n_pad != N:
        x_bf = jnp.pad(x_bf, ((0, n_pad - N), (0, 0)))
    grid = (n_pad // tm,)

    # VMEM budget (double-buffered x/out tiles + resident weights), with headroom.
    # Keep the explicit limit <= 64 MiB so the same sizing is valid on v7x.
    vmem_est = (
        2 * tm * L * 2          # x tile, bf16, double-buffered
        + 2 * tm * C * 4        # out tile, f32, double-buffered
        + 2 * (L * D * 2 + D * 4 + C * D * 4 + C * 4)  # weights/biases
    )
    vmem_limit = int(min(64 * 2**20, max(32 * 2**20, 2 * vmem_est)))

    grid_spec = pl.GridSpec(
        grid=grid,
        in_specs=[
            pl.BlockSpec((tm, L), lambda i: (i, 0)),   # x row tile (bf16)
            pl.BlockSpec((L, D), lambda i: (0, 0)),    # W1 (resident, bf16)
            pl.BlockSpec((1, D), lambda i: (0, 0)),    # b1 (f32)
            pl.BlockSpec((C, D), lambda i: (0, 0)),    # W2 rows (f32)
            pl.BlockSpec((1, C), lambda i: (0, 0)),    # b2 (f32)
        ],
        out_specs=pl.BlockSpec((tm, C), lambda i: (i, 0)),
    )

    out = pl.pallas_call(
        attn_net_kernel,
        out_shape=jax.ShapeDtypeStruct((n_pad, C), jnp.float32),
        grid_spec=grid_spec,
        compiler_params=pltpu.CompilerParams(
            dimension_semantics=("parallel",),
            vmem_limit_bytes=vmem_limit,
        ),
    )(x_bf, w1_bf, b1_f, w2_rows, b2_f)

    return out[:N]


if __name__ == "__main__":
    # Small shapes consistent with Attn_Net(L, D, n_classes=1).
    N, L, D, C = 64, 128, 64, 1

    key = jax.random.PRNGKey(0)
    kx, kw1, kb1, kw2, kb2 = jax.random.split(key, 5)

    x = jax.random.normal(kx, (N, L), dtype=jnp.float32)
    # Deterministic synthetic parameters (PyTorch-like uniform fan-in scale).
    w1 = (jax.random.uniform(kw1, (L, D), minval=-1.0, maxval=1.0) / np.sqrt(L)).astype(jnp.float32)
    b1 = (jax.random.uniform(kb1, (1, D), minval=-1.0, maxval=1.0) / np.sqrt(L)).astype(jnp.float32)
    w2 = (jax.random.uniform(kw2, (D, C), minval=-1.0, maxval=1.0) / np.sqrt(D)).astype(jnp.float32)
    b2 = (jax.random.uniform(kb2, (1, C), minval=-1.0, maxval=1.0) / np.sqrt(D)).astype(jnp.float32)

    out = attn_net_forward(x, w1, b1, w2, b2)
    out = jax.block_until_ready(out)

    # Reference using the same bf16 operand casts (MXU bf16 matmul == f32 math
    # on bf16-rounded operands), tanh/bias/second projection in f32.
    x_q = x.astype(jnp.bfloat16).astype(jnp.float32)
    w1_q = w1.astype(jnp.bfloat16).astype(jnp.float32)
    h_ref = jnp.tanh(x_q @ w1_q + b1)
    ref = h_ref @ w2 + b2
    np.testing.assert_allclose(np.asarray(out), np.asarray(ref), rtol=2e-3, atol=2e-3)

    # Sanity vs. the pure-f32 PyTorch-equivalent math (looser: bf16 inputs).
    ref_f32 = jnp.tanh(x @ w1 + b1) @ w2 + b2
    np.testing.assert_allclose(np.asarray(out), np.asarray(ref_f32), rtol=5e-2, atol=5e-2)

    print("KERNEL_OK")
</pallas_src>

<mosaic_0001>
module attributes {stable_mosaic.version = 11 : i64} {
  func.func @attn_net_kernel(%arg0: i32, %arg1: memref<64x128xbf16, #tpu.memory_space<vmem>>, %arg2: memref<128x64xbf16, #tpu.memory_space<vmem>>, %arg3: memref<1x64xf32, #tpu.memory_space<vmem>>, %arg4: memref<1x64xf32, #tpu.memory_space<vmem>>, %arg5: memref<1x1xf32, #tpu.memory_space<vmem>>, %arg6: memref<64x1xf32, #tpu.memory_space<vmem>>) attributes {dimension_semantics = [#tpu.dimension_semantics<parallel>], iteration_bounds = array<i64: 1>, scalar_prefetch = 0 : i64, scratch_operands = 0 : i64, tpu.core_type = #tpu.core_type<tc>, window_params = [{transform_indices = @transform_0, window_bounds = array<i64: 64, 128>}, {pipeline_mode = #tpu.pipeline_mode<synchronous>, transform_indices = @transform_1, window_bounds = array<i64: 128, 64>}, {pipeline_mode = #tpu.pipeline_mode<synchronous>, transform_indices = @transform_2, window_bounds = array<i64: 1, 64>}, {pipeline_mode = #tpu.pipeline_mode<synchronous>, transform_indices = @transform_3, window_bounds = array<i64: 1, 64>}, {pipeline_mode = #tpu.pipeline_mode<synchronous>, transform_indices = @transform_4, window_bounds = array<i64: 1, 1>}, {transform_indices = @transform_5, window_bounds = array<i64: 64, 1>}]} {
    %c0 = arith.constant 0 : index
    %c0_0 = arith.constant 0 : index
    %0 = vector.load %arg1[%c0, %c0_0] : memref<64x128xbf16, #tpu.memory_space<vmem>>, vector<64x128xbf16>
    %c0_1 = arith.constant 0 : index
    %c0_2 = arith.constant 0 : index
    %1 = vector.load %arg2[%c0_1, %c0_2] : memref<128x64xbf16, #tpu.memory_space<vmem>>, vector<128x64xbf16>
    %cst = arith.constant dense<0.000000e+00> : vector<64x64xf32>
    %2 = tpu.matmul %0, %1, %cst {dimension_numbers = #tpu.dot_dimension_numbers<[1], [0], [0], [1], [0, 0, 1, 1], [], []>} : vector<64x128xbf16>, vector<128x64xbf16>, vector<64x64xf32> -> vector<64x64xf32>
    %c0_3 = arith.constant 0 : index
    %c0_4 = arith.constant 0 : index
    %3 = vector.load %arg3[%c0_3, %c0_4] : memref<1x64xf32, #tpu.memory_space<vmem>>, vector<1x64xf32>
    %4 = vector.broadcast %3 : vector<1x64xf32> to vector<64x64xf32>
    %5 = arith.addf %2, %4 : vector<64x64xf32>
    %6 = math.tanh %5 : vector<64x64xf32>
    %c0_5 = arith.constant 0 : index
    %c0_6 = arith.constant 0 : index
    %7 = vector.load %arg4[%c0_5, %c0_6] : memref<1x64xf32, #tpu.memory_space<vmem>>, vector<1x64xf32>
    %c0_7 = arith.constant 0 : index
    %c0_8 = arith.constant 0 : index
    %8 = vector.load %arg5[%c0_7, %c0_8] : memref<1x1xf32, #tpu.memory_space<vmem>>, vector<1x1xf32>
    %9 = vector.shape_cast %7 : vector<1x64xf32> to vector<64xf32>
    %10 = vector.shape_cast %9 : vector<64xf32> to vector<1x64xf32>
    %11 = vector.broadcast %10 : vector<1x64xf32> to vector<64x64xf32>
    %12 = arith.mulf %6, %11 : vector<64x64xf32>
    %cst_9 = arith.constant dense<0.000000e+00> : vector<64xf32>
    %13 = vector.multi_reduction <add>, %12, %cst_9 [1] : vector<64x64xf32> to vector<64xf32>
    %14 = vector.shape_cast %13 : vector<64xf32> to vector<64x1xf32>
    %15 = vector.broadcast %8 : vector<1x1xf32> to vector<64x1xf32>
    %16 = arith.addf %14, %15 : vector<64x1xf32>
    %c0_10 = arith.constant 0 : index
    %c0_11 = arith.constant 0 : index
    %17 = vector.load %arg6[%c0_10, %c0_11] : memref<64x1xf32, #tpu.memory_space<vmem>>, vector<64x1xf32>
    tpu.vector_store %arg6[%c0_10, %c0_11], %16 {strides = array<i32>} : memref<64x1xf32, #tpu.memory_space<vmem>>, vector<64x1xf32>,
    return
  }
  func.func @transform_0(%arg0: i32) -> (i32, i32) {
    %c0_i32 = arith.constant 0 : i32
    %c0_i32_0 = arith.constant 0 : i32
    return %arg0, %c0_i32 : i32, i32
  }
  func.func @transform_1(%arg0: i32) -> (i32, i32) {
    %c0_i32 = arith.constant 0 : i32
    %c0_i32_0 = arith.constant 0 : i32
    %c0_i32_1 = arith.constant 0 : i32
    return %c0_i32, %c0_i32_0 : i32, i32
  }
  func.func @transform_2(%arg0: i32) -> (i32, i32) {
    %c0_i32 = arith.constant 0 : i32
    %c0_i32_0 = arith.constant 0 : i32
    %c0_i32_1 = arith.constant 0 : i32
    return %c0_i32, %c0_i32_0 : i32, i32
  }
  func.func @transform_3(%arg0: i32) -> (i32, i32) {
    %c0_i32 = arith.constant 0 : i32
    %c0_i32_0 = arith.constant 0 : i32
    %c0_i32_1 = arith.constant 0 : i32
    return %c0_i32, %c0_i32_0 : i32, i32
  }
  func.func @transform_4(%arg0: i32) -> (i32, i32) {
    %c0_i32 = arith.constant 0 : i32
    %c0_i32_0 = arith.constant 0 : i32
    %c0_i32_1 = arith.constant 0 : i32
    return %c0_i32, %c0_i32_0 : i32, i32
  }
  func.func @transform_5(%arg0: i32) -> (i32, i32) {
    %c0_i32 = arith.constant 0 : i32
    %c0_i32_0 = arith.constant 0 : i32
    return %arg0, %c0_i32 : i32, i32
  }
}

</mosaic_0001>

<bundles_post_ra>
// kernel: tpu_custom_call.1
= control target key start
LH: loop header
LB: loop body
LE: loop exit
PB: predicated region body
PF: predicated region fallthrough
CT: control target
= control target key end

     0   :  { %vm215_vm0 = vcmask 523264   ;;  %vm254_vm1 = vcmask 7168   ;;  %s477_s1 = inlined_call_operand.vmem [shape: bf16[128,64], index: 1, kind: input, shape index: {}]   ;;  %s478_s0 = inlined_call_operand.vmem [shape: bf16[64,128], index: 0, kind: input, shape index: {}]   ;;  %s479_s4 = inlined_call_operand.<no memory space> [shape: f32[1,1], index: 4, kind: input, shape index: {}]   ;;  %s480_s2 = inlined_call_operand.vmem [shape: f32[1,64], index: 2, kind: input, shape index: {}]   ;;  %s481_s3 = inlined_call_operand.vmem [shape: f32[1,64], index: 3, kind: input, shape index: {}]   ;;  %s482_s5 = inlined_call_operand.vmem [shape: f32[64,1], index: 5, kind: output, shape index: {}]  }
   0x1   :  { %v334_v0 = vld [vmem:[%s477_s1] sm:$0xff]   ;;  %v335_v1 = vld [vmem:[%s477_s1 + $0x8] sm:$0xff]   ;;  %v336_v2 = vld [vmem:[%s477_s1 + $0x10] sm:$0xff]   ;;  %v10_v12 = vstv %s479_s4 }
   0x2   :  { %294 = vmatprep.subr.bf16.mxu0 %v334_v0  ;;  %318 = vmatprep.subr.bf16.mxu1 %v334_v0  ;;  %v337_v3 = vld [vmem:[%s477_s1 + $0x18] sm:$0xff]   ;;  %v342_v4 = vld [vmem:[%s478_s0] sm:$0xff]   ;;  %v344_v5 = vld [vmem:[%s478_s0 + $0x10] sm:$0xff]   ;;  %11 = vst [vmem:[#allocation2] sm:$0x1] %v10_v12 }
   0x3   :  { %295 = vmatpush3.bf16.msra.mxu0 %v334_v0  ;;  %326 = vmatpush3.bf16.msra.mxu1 %v334_v0  ;;  %v338_v6 = vld [vmem:[%s477_s1 + $0x20] sm:$0xff]   ;;  %v339_v7 = vld [vmem:[%s477_s1 + $0x28] sm:$0xff]   ;;  %v340_v8 = vld [vmem:[%s477_s1 + $0x30] sm:$0xff]  }
   0x4   :  { %296 = vmatprep.subr.bf16.mxu0 %v335_v1  ;;  %319 = vmatprep.subr.bf16.mxu1 %v335_v1  ;;  %v341_v9 = vld [vmem:[%s477_s1 + $0x38] sm:$0xff]   ;;  %v343_v10 = vld [vmem:[%s478_s0 + $0x8] sm:$0xff]   ;;  %v267_v13 = vld [vmem:[%s480_s2] ss:$0 sm:$0xff] }
   0x5   :  { %310 = vmatprep.mubr.bf16.mxu0 %v342_v4  ;;  %314 = vmatprep.mubr.bf16.mxu1 %v344_v5  ;;  %v345_v11 = vld [vmem:[%s478_s0 + $0x18] sm:$0xff]   ;;  %v280_v30 = vld [vmem:[%s481_s3] ss:$0 sm:$0xff] }
   0x7   :  { %297 = vmatpush3.bf16.msra.mxu0 %v335_v1  ;;  %327 = vmatpush3.bf16.msra.mxu1 %v335_v1 }
   0x8   :  { %298 = vmatprep.subr.bf16.mxu0 %v336_v2  ;;  %320 = vmatprep.subr.bf16.mxu1 %v336_v2 }
   0x9   :  { %v281_v55 = vld [vmem:[#allocation2] ss:$0 sm:$0xff] }
   0xb   :  { %299 = vmatpush3.bf16.msra.mxu0 %v336_v2  ;;  %328 = vmatpush3.bf16.msra.mxu1 %v336_v2 }
   0xc   :  { %300 = vmatprep.subr.bf16.mxu0 %v337_v3  ;;  %321 = vmatprep.subr.bf16.mxu1 %v337_v3 }
   0xf   :  { %301 = vmatpush3.bf16.msra.mxu0 %v337_v3  ;;  %329 = vmatpush3.bf16.msra.mxu1 %v337_v3 }
  0x10   :  { %302 = vmatprep.subr.bf16.mxu0 %v338_v6  ;;  %322 = vmatprep.subr.bf16.mxu1 %v338_v6 }
  0x13   :  { %303 = vmatpush3.bf16.msra.mxu0 %v338_v6  ;;  %330 = vmatpush3.bf16.msra.mxu1 %v338_v6 }
  0x14   :  { %304 = vmatprep.subr.bf16.mxu0 %v339_v7  ;;  %323 = vmatprep.subr.bf16.mxu1 %v339_v7 }
  0x17   :  { %305 = vmatpush3.bf16.msra.mxu0 %v339_v7  ;;  %331 = vmatpush3.bf16.msra.mxu1 %v339_v7 }
  0x18   :  { %306 = vmatprep.subr.bf16.mxu0 %v340_v8  ;;  %324 = vmatprep.subr.bf16.mxu1 %v340_v8 }
  0x1b   :  { %307 = vmatpush3.bf16.msra.mxu0 %v340_v8  ;;  %332 = vmatpush3.bf16.msra.mxu1 %v340_v8 }
  0x1c   :  { %308 = vmatprep.subr.bf16.mxu0 %v341_v9  ;;  %325 = vmatprep.subr.bf16.mxu1 %v341_v9 }
  0x1f   :  { %309 = vmatpush3.bf16.msra.mxu0 %v341_v9  ;;  %333 = vmatpush3.bf16.msra.mxu1 %v341_v9 }
  0x22   :  { %311 = vmatmul.mubr.bf16.vlgmr.msra.gmra.mrb[0].mxu0 %v343_v10  ;;  %315 = vmatmul.mubr.bf16.vlgmr.msra.gmra.mrb[0].mxu1 %v345_v11 }
  0xf5   :  { %v312_v14 = vpop.f32.mrb[0].mxu0  ;;  %v316_v15 = vpop.f32.mrb[0].mxu1 }
  0xf6   :  { %v169_v16 = vadd.f32 %v312_v14, %v267_v13  ;;  %v160_v17 = vpop.f32.mrb[1].mxu0  ;;  %v176_v18 = vpop.f32.mrb[1].mxu1  ;;  %v185_v29 = vadd.f32 %v316_v15, %v267_v13 }
  0xf7   :  { %v161_v19 = vadd.f32 %v267_v13, %v160_v17  ;;  %v313_v20 = vpop.f32.mrb[2].mxu0  ;;  %v317_v21 = vpop.f32.mrb[2].mxu1  ;;  %v177_v23 = vadd.f32 %v267_v13, %v176_v18 }
  0xf8   :  { %346 = vtanh.f32 %v169_v16  ;;  %v172_v22 = vadd.f32 %v313_v20, %v267_v13  ;;  %v163_v24 = vpop.f32.mrb[3].mxu0  ;;  %v179_v25 = vpop.f32.mrb[3].mxu1  ;;  %v188_v28 = vadd.f32 %v317_v21, %v267_v13 }
  0xf9   :  { %348 = vtanh.f32 %v161_v19  ;;  %v164_v26 = vadd.f32 %v267_v13, %v163_v24  ;;  %v180_v27 = vadd.f32 %v267_v13, %v179_v25 }
  0xfa   :  { %350 = vtanh.f32 %v172_v22 }
  0xfb   :  { %352 = vtanh.f32 %v177_v23 }
  0xfc   :  { %354 = vtanh.f32 %v164_v26 }
  0xfd   :  { %356 = vtanh.f32 %v180_v27 }
  0xfe   :  { %358 = vtanh.f32 %v188_v28 }
  0xff   :  { %360 = vtanh.f32 %v185_v29 }
 0x102   :  { %v347_v31 = vpop.eup %346 }
 0x103   :  { %v349_v32 = vpop.eup %348  ;;  %v209_v33 = vmul.f32 %v347_v31, %v280_v30 }
 0x104   :  { %v207_v34 = vmul.f32 %v349_v32, %v280_v30  ;;  %v351_v35 = vpop.eup %350 }
 0x105   :  { %v222_v36 = vsel %vm215_vm0, %v209_v33, 0.0  ;;  %v353_v37 = vpop.eup %352  ;;  %v210_v39 = vmul.f32 %v351_v35, %v280_v30 }
 0x106   :  { %223 = vadd.xlane.f32.xlu1 %v222_v36  ;;  %v216_v38 = vsel %vm215_vm0, %v207_v34, 0.0  ;;  %v355_v40 = vpop.eup %354  ;;  %v211_v41 = vmul.f32 %v353_v37, %v280_v30 }
 0x107   :  { %217 = vadd.xlane.f32.xlu0 %v216_v38  ;;  %v357_v42 = vpop.eup %356  ;;  %v225_v43 = vsel %vm215_vm0, %v210_v39, 0.0  ;;  %v208_v47 = vmul.f32 %v355_v40, %v280_v30 }
 0x108   :  { %v228_v44 = vsel %vm215_vm0, %v211_v41, 0.0  ;;  %v359_v45 = vpop.eup %358  ;;  %v212_v46 = vmul.f32 %v357_v42, %v280_v30 }
 0x109   :  { %v361_v48 = vpop.eup %360  ;;  %v214_v50 = vmul.f32 %v359_v45, %v280_v30  ;;  %v219_v51 = vsel %vm215_vm0, %v208_v47, 0.0 }
 0x10a   :  { %226 = vadd.xlane.f32.xlu1 %v225_v43  ;;  %v231_v49 = vsel %vm215_vm0, %v212_v46, 0.0  ;;  %v213_v52 = vmul.f32 %v361_v48, %v280_v30 }
 0x10b   :  { %229 = vadd.xlane.f32.xlu0 %v228_v44  ;;  %v237_v53 = vsel %vm215_vm0, %v214_v50, 0.0 }
 0x10c   :  { %v234_v54 = vsel %vm215_vm0, %v213_v52, 0.0 }
 0x10e   :  { %232 = vadd.xlane.f32.xlu1 %v231_v49 }
 0x10f   :  { %220 = vadd.xlane.f32.xlu0 %v219_v51 }
 0x112   :  { %238 = vadd.xlane.f32.xlu1 %v237_v53 }
 0x113   :  { %235 = vadd.xlane.f32.xlu0 %v234_v54 }
 0x193   :  { %v224_v56 = vpop.xlane.xlu1 %223 }
 0x194   :  { %v248_v57 = vadd.f32 %v281_v55, %v224_v56  ;;  %v218_v58 = vpop.xlane.xlu0 %217 }
 0x195   :  { %v246_v59 = vadd.f32 %v281_v55, %v218_v58 }
 0x196   :  { %257 = vst.msk [vmem:[%s482_s5 + $0x10] sm:$0xff] %vm254_vm1, %v248_v57 }
 0x197   :  { %255 = vst.msk [vmem:[%s482_s5] sm:$0xff] %vm254_vm1, %v246_v59  ;;  %v227_v60 = vpop.xlane.xlu1 %226 }
 0x198   :  { %v249_v61 = vadd.f32 %v281_v55, %v227_v60  ;;  %v230_v62 = vpop.xlane.xlu0 %229 }
 0x199   :  { %v250_v63 = vadd.f32 %v281_v55, %v230_v62 }
 0x19a   :  { %258 = vst.msk [vmem:[%s482_s5 + $0x18] sm:$0xff] %vm254_vm1, %v249_v61 }
 0x19b   :  { %259 = vst.msk [vmem:[%s482_s5 + $0x20] sm:$0xff] %vm254_vm1, %v250_v63  ;;  %v233_v0 = vpop.xlane.xlu1 %232 }
 0x19c   :  { %v251_v1 = vadd.f32 %v281_v55, %v233_v0  ;;  %v221_v2 = vpop.xlane.xlu0 %220 }
 0x19d   :  { %v247_v3 = vadd.f32 %v281_v55, %v221_v2 }
 0x19e   :  { %260 = vst.msk [vmem:[%s482_s5 + $0x28] sm:$0xff] %vm254_vm1, %v251_v1 }
 0x19f   :  { %256 = vst.msk [vmem:[%s482_s5 + $0x8] sm:$0xff] %vm254_vm1, %v247_v3  ;;  %v239_v4 = vpop.xlane.xlu1 %238 }
 0x1a0   :  { %v253_v5 = vadd.f32 %v281_v55, %v239_v4  ;;  %v236_v6 = vpop.xlane.xlu0 %235 }
 0x1a1   :  { %v252_v7 = vadd.f32 %v281_v55, %v236_v6 }
 0x1a2   :  { %262 = vst.msk [vmem:[%s482_s5 + $0x38] sm:$0xff] %vm254_vm1, %v253_v5 }
 0x1a3   :  { %261 = vst.msk [vmem:[%s482_s5 + $0x30] sm:$0xff] %vm254_vm1, %v252_v7 }

</bundles_post_ra>
